<compile_context>
chip_gen: v6e
topology: v6e:2x2x1
jax: 0.10.0
libtpu: 0.0.40
codegen_flags: <defaults>
</compile_context>

<pallas_src>
import functools

import jax
import jax.numpy as jnp
from jax.experimental import pallas as pl
from jax.experimental.pallas import tpu as pltpu


def _round_up(v, m):
    return ((v + m - 1) // m) * m


def _mlp_kernel(x_ref, w1_ref, b1_ref, w2_ref, b2_ref, o_ref):
    # Fused hot path: matmul1 + bias -> LeakyReLU(0.2) -> matmul2 + bias
    x = x_ref[...]
    h = jnp.dot(x, w1_ref[...], preferred_element_type=jnp.float32) + b1_ref[...]
    h = jnp.where(h > 0, h, 0.2 * h)            # LeakyReLU(negative_slope=0.2), f32
    o = jnp.dot(h.astype(w2_ref.dtype), w2_ref[...],
                preferred_element_type=jnp.float32) + b2_ref[...]
    o_ref[...] = o.astype(o_ref.dtype)


def logistic_regression_forward(x, w1, b1, w2, b2, *, return_feat=False,
                                block_batch=None,
                                vmem_budget_bytes=24 * 1024 * 1024):
    """x: (B, in_dim). w1: (in_dim, hid), b1: (1, hid), w2: (hid, out), b2: (1, out)."""
    B, in_dim = x.shape
    hid_dim = w1.shape[1]
    out_dim = w2.shape[1]
    assert w1.shape[0] == in_dim and w2.shape[0] == hid_dim

    itemsize = jnp.dtype(x.dtype).itemsize

    # ---- lane-dense output: pad out_dim up to a multiple of 128 (unmasked vst) ----
    out_pad = max(128, _round_up(out_dim, 128))
    if out_pad != out_dim:
        w2p = jnp.pad(w2, ((0, 0), (0, out_pad - out_dim)))
        b2p = jnp.pad(b2.reshape(1, out_dim), ((0, 0), (0, out_pad - out_dim)))
    else:
        w2p = w2
        b2p = b2.reshape(1, out_dim)
    b1r = b1.reshape(1, hid_dim)

    # ---- VMEM-derived batch tile (conservative budget fits v5e/v6e/v7x scoped VMEM) ----
    weight_bytes = (in_dim * hid_dim + hid_dim * out_pad + hid_dim + out_pad) * itemsize
    # double-buffered x + out tiles per row, plus the f32 hidden activation
    per_row_bytes = 2 * (in_dim + out_pad) * itemsize + hid_dim * 4
    if block_batch is None:
        avail = max(vmem_budget_bytes - weight_bytes, 8 * per_row_bytes)
        bb = max(8, min(512, avail // per_row_bytes))
        bb = (bb // 256) * 256 if bb >= 256 else (bb // 8) * 8  # MXU/sublane alignment
        block_batch = int(min(bb, _round_up(B, 8)))
    assert block_batch % 8 == 0, "block_batch must be a multiple of 8 (sublane tiling)"

    # ---- remainder handling: pad batch so the grid divides evenly ----
    B_pad = _round_up(B, block_batch)
    xp = jnp.pad(x, ((0, B_pad - B), (0, 0))) if B_pad != B else x
    grid = (B_pad // block_batch,)

    cost = pl.CostEstimate(
        flops=2 * B_pad * (in_dim * hid_dim + hid_dim * out_pad),
        transcendentals=0,
        bytes_accessed=B_pad * (in_dim + out_pad) * itemsize + weight_bytes,
    )

    # Weights/biases never change across the grid -> single buffer (saves VMEM).
    resident = functools.partial(pl.BlockSpec, pipeline_mode=pl.Buffered(1))

    out_p = pl.pallas_call(
        _mlp_kernel,
        out_shape=jax.ShapeDtypeStruct((B_pad, out_pad), x.dtype),
        grid_spec=pltpu.PrefetchScalarGridSpec(
            num_scalar_prefetch=0,
            grid=grid,
            in_specs=[
                pl.BlockSpec((block_batch, in_dim), lambda i: (i, 0)),   # x tile (pipelined)
                resident((in_dim, hid_dim), lambda i: (0, 0)),           # w1 (resident)
                resident((1, hid_dim), lambda i: (0, 0)),                # b1
                resident((hid_dim, out_pad), lambda i: (0, 0)),          # w2 (lane-padded)
                resident((1, out_pad), lambda i: (0, 0)),                # b2
            ],
            out_specs=pl.BlockSpec((block_batch, out_pad), lambda i: (i, 0)),
        ),
        compiler_params=pltpu.CompilerParams(
            dimension_semantics=("parallel",),   # megacore sharding on v7x
        ),
        cost_estimate=cost,
    )(xp, w1, b1r, w2p, b2p)

    out = out_p[:B, :out_dim]
    if return_feat:
        return out, x
    return out


def _ref_forward(x, w1, b1, w2, b2):
    h = x @ w1 + b1
    h = jnp.where(h > 0, h, 0.2 * h)
    return h @ w2 + b2


if __name__ == "__main__":
    # Small shapes consistent with the module: batch=8, in_dim=32, hid_dim=64, out_dim=16
    B, in_dim, hid_dim, out_dim = 8, 32, 64, 16

    key = jax.random.PRNGKey(0)
    kx, kw1, kb1, kw2, kb2 = jax.random.split(key, 5)

    x = jax.random.normal(kx, (B, in_dim), dtype=jnp.float32)
    # deterministic parameter init (synthetic; mirrors nn.Linear uniform-ish scale)
    w1 = jax.random.uniform(kw1, (in_dim, hid_dim), jnp.float32,
                            minval=-1.0, maxval=1.0) / jnp.sqrt(in_dim)
    b1 = jax.random.uniform(kb1, (1, hid_dim), jnp.float32,
                            minval=-1.0, maxval=1.0) / jnp.sqrt(in_dim)
    w2 = jax.random.uniform(kw2, (hid_dim, out_dim), jnp.float32,
                            minval=-1.0, maxval=1.0) / jnp.sqrt(hid_dim)
    b2 = jax.random.uniform(kb2, (1, out_dim), jnp.float32,
                            minval=-1.0, maxval=1.0) / jnp.sqrt(hid_dim)

    # default (auto) tile path
    out = logistic_regression_forward(x, w1, b1, w2, b2)
    out = jax.block_until_ready(out)
    ref = _ref_forward(x, w1, b1, w2, b2)
    assert out.shape == (B, out_dim)
    assert jnp.allclose(out, ref, atol=1e-5, rtol=1e-5), "mismatch vs JAX reference"

    # remainder handling + multi-step grid path (B not a multiple of the tile)
    B2 = 20
    x2 = jax.random.normal(jax.random.PRNGKey(1), (B2, in_dim), dtype=jnp.float32)
    out2 = logistic_regression_forward(x2, w1, b1, w2, b2, block_batch=8)
    out2 = jax.block_until_ready(out2)
    ref2 = _ref_forward(x2, w1, b1, w2, b2)
    assert out2.shape == (B2, out_dim)
    assert jnp.allclose(out2, ref2, atol=1e-5, rtol=1e-5), "mismatch (padded batch path)"

    # return_feat path (returns (out, x) exactly like the module)
    out3, feat = logistic_regression_forward(x, w1, b1, w2, b2, return_feat=True)
    jax.block_until_ready(out3)
    assert feat.shape == x.shape

    print("KERNEL_OK")
</pallas_src>

<mosaic_0001>
module attributes {stable_mosaic.version = 11 : i64} {
  func.func @_mlp_kernel(%arg0: i32, %arg1: memref<8x32xf32, #tpu.memory_space<vmem>>, %arg2: memref<32x64xf32, #tpu.memory_space<vmem>>, %arg3: memref<1x64xf32, #tpu.memory_space<vmem>>, %arg4: memref<64x128xf32, #tpu.memory_space<vmem>>, %arg5: memref<1x128xf32, #tpu.memory_space<vmem>>, %arg6: memref<8x128xf32, #tpu.memory_space<vmem>>) attributes {dimension_semantics = [#tpu.dimension_semantics<parallel>], iteration_bounds = array<i64: 1>, scalar_prefetch = 0 : i64, scratch_operands = 0 : i64, tpu.core_type = #tpu.core_type<tc>, window_params = [{transform_indices = @transform_0, window_bounds = array<i64: 8, 32>}, {pipeline_mode = #tpu.pipeline_mode<synchronous>, transform_indices = @transform_1, window_bounds = array<i64: 32, 64>}, {pipeline_mode = #tpu.pipeline_mode<synchronous>, transform_indices = @transform_2, window_bounds = array<i64: 1, 64>}, {pipeline_mode = #tpu.pipeline_mode<synchronous>, transform_indices = @transform_3, window_bounds = array<i64: 64, 128>}, {pipeline_mode = #tpu.pipeline_mode<synchronous>, transform_indices = @transform_4, window_bounds = array<i64: 1, 128>}, {transform_indices = @transform_5, window_bounds = array<i64: 8, 128>}]} {
    %c0 = arith.constant 0 : index
    %c0_0 = arith.constant 0 : index
    %0 = vector.load %arg1[%c0, %c0_0] : memref<8x32xf32, #tpu.memory_space<vmem>>, vector<8x32xf32>
    %c0_1 = arith.constant 0 : index
    %c0_2 = arith.constant 0 : index
    %1 = vector.load %arg2[%c0_1, %c0_2] : memref<32x64xf32, #tpu.memory_space<vmem>>, vector<32x64xf32>
    %cst = arith.constant dense<0.000000e+00> : vector<8x64xf32>
    %2 = tpu.matmul %0, %1, %cst {dimension_numbers = #tpu.dot_dimension_numbers<[1], [0], [0], [1], [0, 0, 1, 1], [], []>} : vector<8x32xf32>, vector<32x64xf32>, vector<8x64xf32> -> vector<8x64xf32>
    %c0_3 = arith.constant 0 : index
    %c0_4 = arith.constant 0 : index
    %3 = vector.load %arg3[%c0_3, %c0_4] : memref<1x64xf32, #tpu.memory_space<vmem>>, vector<1x64xf32>
    %4 = vector.broadcast %3 : vector<1x64xf32> to vector<8x64xf32>
    %5 = arith.addf %2, %4 : vector<8x64xf32>
    %cst_5 = arith.constant 0.000000e+00 : f32
    %6 = vector.broadcast %cst_5 : f32 to vector<8x64xf32>
    %7 = arith.cmpf ogt, %5, %6 : vector<8x64xf32>
    %cst_6 = arith.constant 2.000000e-01 : f32
    %8 = vector.broadcast %cst_6 : f32 to vector<8x64xf32>
    %9 = arith.mulf %8, %5 : vector<8x64xf32>
    %10 = arith.select %7, %5, %9 : vector<8x64xi1>, vector<8x64xf32>
    %c0_7 = arith.constant 0 : index
    %c0_8 = arith.constant 0 : index
    %11 = vector.load %arg4[%c0_7, %c0_8] : memref<64x128xf32, #tpu.memory_space<vmem>>, vector<64x128xf32>
    %cst_9 = arith.constant dense<0.000000e+00> : vector<8x128xf32>
    %12 = tpu.matmul %10, %11, %cst_9 {dimension_numbers = #tpu.dot_dimension_numbers<[1], [0], [0], [1], [0, 0, 1, 1], [], []>} : vector<8x64xf32>, vector<64x128xf32>, vector<8x128xf32> -> vector<8x128xf32>
    %c0_10 = arith.constant 0 : index
    %c0_11 = arith.constant 0 : index
    %13 = vector.load %arg5[%c0_10, %c0_11] : memref<1x128xf32, #tpu.memory_space<vmem>>, vector<1x128xf32>
    %14 = vector.broadcast %13 : vector<1x128xf32> to vector<8x128xf32>
    %15 = arith.addf %12, %14 : vector<8x128xf32>
    %c0_12 = arith.constant 0 : index
    %c0_13 = arith.constant 0 : index
    %16 = vector.load %arg6[%c0_12, %c0_13] : memref<8x128xf32, #tpu.memory_space<vmem>>, vector<8x128xf32>
    tpu.vector_store %arg6[%c0_12, %c0_13], %15 {strides = array<i32>} : memref<8x128xf32, #tpu.memory_space<vmem>>, vector<8x128xf32>,
    return
  }
  func.func @transform_0(%arg0: i32) -> (i32, i32) {
    %c0_i32 = arith.constant 0 : i32
    %c0_i32_0 = arith.constant 0 : i32
    return %arg0, %c0_i32 : i32, i32
  }
  func.func @transform_1(%arg0: i32) -> (i32, i32) {
    %c0_i32 = arith.constant 0 : i32
    %c0_i32_0 = arith.constant 0 : i32
    %c0_i32_1 = arith.constant 0 : i32
    return %c0_i32, %c0_i32_0 : i32, i32
  }
  func.func @transform_2(%arg0: i32) -> (i32, i32) {
    %c0_i32 = arith.constant 0 : i32
    %c0_i32_0 = arith.constant 0 : i32
    %c0_i32_1 = arith.constant 0 : i32
    return %c0_i32, %c0_i32_0 : i32, i32
  }
  func.func @transform_3(%arg0: i32) -> (i32, i32) {
    %c0_i32 = arith.constant 0 : i32
    %c0_i32_0 = arith.constant 0 : i32
    %c0_i32_1 = arith.constant 0 : i32
    return %c0_i32, %c0_i32_0 : i32, i32
  }
  func.func @transform_4(%arg0: i32) -> (i32, i32) {
    %c0_i32 = arith.constant 0 : i32
    %c0_i32_0 = arith.constant 0 : i32
    %c0_i32_1 = arith.constant 0 : i32
    return %c0_i32, %c0_i32_0 : i32, i32
  }
  func.func @transform_5(%arg0: i32) -> (i32, i32) {
    %c0_i32 = arith.constant 0 : i32
    %c0_i32_0 = arith.constant 0 : i32
    return %arg0, %c0_i32 : i32, i32
  }
}

</mosaic_0001>

<bundles_post_ra>
// kernel: tpu_custom_call.1
= control target key start
LH: loop header
LB: loop body
LE: loop exit
PB: predicated region body
PF: predicated region fallthrough
CT: control target
= control target key end

     0   :  { %10 = vsyncpa [#allocation3], 0  ;;  %s453_s0 = inlined_call_operand.hbm [shape: f32[8,32], index: 0, kind: input, shape index: {}]   ;;  %s454_s1 = inlined_call_operand.hbm [shape: f32[32,64], index: 1, kind: input, shape index: {}]   ;;  %s455_s2 = inlined_call_operand.vmem [shape: f32[1,64], index: 2, kind: input, shape index: {}]   ;;  %s456_s3 = inlined_call_operand.hbm [shape: f32[64,128], index: 3, kind: input, shape index: {}]   ;;  %s457_s4 = inlined_call_operand.vmem [shape: f32[1,128], index: 4, kind: input, shape index: {}]   ;;  %s458_s5 = inlined_call_operand.hbm [shape: f32[8,128], index: 5, kind: output, shape index: {}]  }
   0x1   :  { %11 = vsyncpa [#allocation6], 0 }
   0x2   :  { %12 = vsyncpa [#allocation4], 0  ;;  %s397_s18 = smov [#allocation5]  }
   0x3   :  { %s28_s19 = sshll.u32 %s397_s18, 4  ;;  %s29_s19 = int_to_ptr.vmem [resolvable:$true] %s28_s19 }
   0x4   :  { %s319_s20 = scalar_lea.vmem %s29_s19, 512  ;;  %p324_p1 = scmp.lt.s32.totalorder %s29_s19, %s29_s19 }
   0x5   :  { %p320_p0 = scmp.ne.s32.totalorder %s29_s19, %s319_s20  ;;  %p325_p2 = scmp.lt.s32.totalorder %s319_s20, %s319_s20 }
   0x7   :  { %p326_p3 = por %p325_p2, %p324_p1 }
   0x9   :  { %p327_p4 = pnand %p326_p3, %p320_p0 }
   0xb   :  { %330 = shalt.err (!%p327_p4)
}
   0xc   :  { %s398_s21 = smov 128   ;;  %s399_s22 = smov 8  }
   0xd   :  { %34 = dma.hbm_to_vmem [thread:$0]  %s454_s1, 512, %s29_s19, [#allocation6], %s398_s21, %s398_s21, %s399_s22  }
   0xe   :  { %s400_s25 = smov [#allocation2]   ;;  %s401_s27 = smov [#allocation7]  }
   0xf   :  { %s19_s26 = sshll.u32 %s400_s25, 4  ;;  %s42_s28 = sshll.u32 %s401_s27, 4  ;;  %s20_s26 = int_to_ptr.vmem [resolvable:$true] %s19_s26  ;;  %s43_s28 = int_to_ptr.vmem [resolvable:$true] %s42_s28 }
  0x10   :  { %s339_s29 = scalar_lea.vmem %s20_s26, 128  ;;  %p344_p6 = scmp.lt.s32.totalorder %s20_s26, %s20_s26 }
  0x11   :  { %p340_p5 = scmp.ne.s32.totalorder %s20_s26, %s339_s29  ;;  %p345_p7 = scmp.lt.s32.totalorder %s339_s29, %s339_s29 }
  0x13   :  { %p346_p8 = por %p345_p7, %p344_p6 }
  0x15   :  { %p347_p9 = pnand %p346_p8, %p340_p5 }
  0x17   :  { %350 = shalt.err (!%p347_p9)
}
  0x18   :  { %22 = dma.hbm_to_vmem [thread:$0]  %s453_s0, 128, %s20_s26, [#allocation3]  }
  0x19   :  { %s359_s7 = scalar_lea.vmem %s43_s28, 1024  ;;  %p364_p11 = scmp.lt.s32.totalorder %s43_s28, %s43_s28 }
  0x1a   :  { %p360_p10 = scmp.ne.s32.totalorder %s43_s28, %s359_s7  ;;  %p365_p12 = scmp.lt.s32.totalorder %s359_s7, %s359_s7 }
  0x1c   :  { %p366_p13 = por %p365_p12, %p364_p11 }
  0x1e   :  { %p367_p0 = pnand %p366_p13, %p360_p10 }
  0x20   :  { %370 = shalt.err (!%p367_p0)
}
  0x21   :  { %48 = dma.hbm_to_vmem [thread:$0]  %s456_s3, 1024, %s43_s28, [#allocation6], %s398_s21, %s398_s21, %s399_s22  }
  0x22   :  { %391 = dma.done.wait [#allocation3], 128  }
  0x23   :  { %392 = vsyncadd [#allocation3], 4294967168 }
  0x24   :  { %393 = dma.done.wait [#allocation6], 1536  }
  0x25   :  { %394 = vsyncadd [#allocation6], 4294965760  ;;  %v402_v0 = vmov 0.0   ;;  %vm403_vm0 = vmmov 0   ;;  %v64_v1 = vld [vmem:[#allocation5 + $0x18] sm:$0xff]  ;;  %v63_v2 = vld [vmem:[#allocation5 + $0x10] sm:$0xff] }
  0x26   :  { %273 = vmatprep.subr.mxu0 %v402_v0  ;;  %281 = vmatprep.mubr.msk.f32.mxu0 %vm403_vm0, %v402_v0  ;;  %v156_v3 = vld [vmem:[#allocation7 + $0x38] sm:$0xff]  ;;  %v62_v4 = vld [vmem:[#allocation5 + $0x8] sm:$0xff]  ;;  %v155_v5 = vld [vmem:[#allocation7 + $0x30] sm:$0xff]  ;;  %vm72_vm1 = vcmask 261120   ;;  %vm164_vm3 = vcmask 523264   ;;  %s404_s11 = smov [#allocation8]  }
  0x27   :  { %284 = vmatprep.subr.mxu1 %v402_v0  ;;  %300 = vmatprep.mubr.msk.f32.mxu1 %vm403_vm0, %v402_v0  ;;  %v154_v6 = vld [vmem:[#allocation7 + $0x28] sm:$0xff]  ;;  %v61_v7 = vld [vmem:[#allocation5] sm:$0xff]  ;;  %v60_v8 = vld [vmem:[#allocation2] sm:$0xff]  ;;  %s245_s12 = sshll.u32 %s404_s11, 4  ;;  %s246_s12 = int_to_ptr.vmem [resolvable:$true] %s245_s12 }
  0x28   :  { %274 = vmatpush3.msra.mxu0 %v64_v1  ;;  %285 = vmatpush3.msra.mxu1 %v156_v3  ;;  %v153_v9 = vld [vmem:[#allocation7 + $0x20] sm:$0xff]  ;;  %v152_v10 = vld [vmem:[#allocation7 + $0x18] sm:$0xff]  ;;  %v151_v11 = vld [vmem:[#allocation7 + $0x10] sm:$0xff]  ;;  %p376_p2 = scmp.lt.s32.totalorder %s246_s12, %s246_s12 }
  0x29   :  { %275 = vmatprep.subr.mxu0 %v402_v0  ;;  %286 = vmatprep.subr.mxu1 %v402_v0  ;;  %v150_v12 = vld [vmem:[#allocation7 + $0x8] sm:$0xff]  ;;  %v149_v13 = vld [vmem:[#allocation7] sm:$0xff]  ;;  %v255_v14 = vld [vmem:[%s455_s2] ss:$0 sm:$0xff]  ;;  %s371_s2 = scalar_lea.vmem %s246_s12, 128 }
  0x2a   :  { %276 = vmatpush3.msra.mxu0 %v63_v2  ;;  %287 = vmatpush3.msra.mxu1 %v155_v5  ;;  %v257_v20 = vld [vmem:[%s457_s4] ss:$0 sm:$0xff]  ;;  %p372_p1 = scmp.ne.s32.totalorder %s246_s12, %s371_s2  ;;  %p377_p3 = scmp.lt.s32.totalorder %s371_s2, %s371_s2 }
  0x2b   :  { %277 = vmatprep.subr.mxu0 %v402_v0  ;;  %288 = vmatprep.subr.mxu1 %v402_v0 }
  0x2c   :  { %278 = vmatpush3.msra.mxu0 %v62_v4  ;;  %289 = vmatpush3.msra.mxu1 %v154_v6  ;;  %p378_p4 = por %p377_p3, %p376_p2 }
  0x2d   :  { %279 = vmatprep.subr.mxu0 %v402_v0  ;;  %290 = vmatprep.subr.mxu1 %v402_v0 }
  0x2e   :  { %280 = vmatpush3.msra.mxu0 %v61_v7  ;;  %291 = vmatpush3.msra.mxu1 %v153_v9  ;;  %p379_p5 = pnand %p378_p4, %p372_p1 }
  0x2f   :  { %282 = vmatmul.mubr.msk.f32.vlgmr.msra.gmra.mxu0 %vm72_vm1, %v60_v8  ;;  %292 = vmatprep.subr.mxu1 %v402_v0 }
  0x30   :  { %293 = vmatpush3.msra.mxu1 %v152_v10 }
  0x31   :  { %294 = vmatprep.subr.mxu1 %v402_v0 }
  0x32   :  { %295 = vmatpush3.msra.mxu1 %v151_v11 }
  0x33   :  { %296 = vmatprep.subr.mxu1 %v402_v0 }
  0x34   :  { %297 = vmatpush3.msra.mxu1 %v150_v12 }
  0x35   :  { %298 = vmatprep.subr.mxu1 %v402_v0 }
  0x36   :  { %299 = vmatpush3.msra.mxu1 %v149_v13 }
  0xef   :  { %v142_v15 = vpop.f32.mrf.mxu0 }
  0xf0   :  { %v143_v16 = vadd.f32 %v255_v14, %v142_v15 }
  0xf1   :  { %v283_v17 = vpop.f32.mrf.mxu0 }
  0xf2   :  { %vm146_vm2 = vcmp.gt.f32.partialorder %v143_v16, 0.0  ;;  %v147_v18 = vmul.f32 0.2, %v143_v16 }
  0xf4   :  { %v148_v19 = vsel %vm146_vm2, %v143_v16, %v147_v18 }
  0xf5   :  { %301 = vmatmul.mubr.msk.f32.vlgmr.msra.gmra.mxu1 %vm164_vm3, %v148_v19 }
 0x1b5   :  { %v234_v21 = vpop.f32.mrf.mxu1 }
 0x1b6   :  { %v235_v22 = vadd.f32 %v257_v20, %v234_v21 }
 0x1b7   :  { %v302_v23 = vpop.f32.mrf.mxu1 }
 0x1b8   :  { %238 = vst [vmem:[#allocation8] sm:$0xff] %v235_v22 }
 0x1b9   :  { %382 = shalt.err (!%p379_p5)
}
 0x1ba   :  { %248 = dma.vmem_to_hbm [thread:$0]  %s246_s12, 128, %s458_s5, [#allocation4]  }
 0x1bb   :  { %395 = dma.done.wait [#allocation4], 128  }
 0x1bc   :  { %396 = vsyncadd [#allocation4], 4294967168 }
 0x1bd   :  { %252 = vsyncpa [#allocation3], 1 }
 0x1be   :  { %253 = vsyncpa [#allocation6], 1 }
 0x1bf   :  { %254 = vsyncpa [#allocation4], 1 }

</bundles_post_ra>
